<compile_context>
chip_gen: v5e
topology: v5e:2x2
jax: 0.10.0
libtpu: 0.0.40
codegen_flags: <defaults>
</compile_context>

<pallas_src>
import functools
import math

import jax
import jax.numpy as jnp
from jax.experimental import pallas as pl
from jax.experimental.pallas import tpu as pltpu


def _round_up(x, m):
    return (x + m - 1) // m * m


def _rel_pos_bias_kernel(w_ref, o_ref, *, k_len, tile, num_buckets, max_distance):
    half_buckets = num_buckets // 2            # buckets reserved per sign
    max_exact = half_buckets // 2              # exact small-offset range
    # Compile-time scalars (shared with the reference so rounding matches).
    log_mult = (half_buckets - max_exact) / math.log(max_distance / max_exact)
    inv_max_exact = 1.0 / float(max_exact)

    # Global flat position p = i * k_len + j for this tile (lane axis).
    t = pl.program_id(0)
    p = jax.lax.broadcasted_iota(jnp.int32, (1, tile), 1) + t * tile

    if (k_len & (k_len - 1)) == 0:
        # Power-of-two k_len: recover (i, j) with shift/mask (pure VALU, cheap).
        shift = k_len.bit_length() - 1
        i = p >> shift
        j = p & (k_len - 1)
    else:
        # TODO(synk): non-power-of-two k_len falls back to a per-vreg int32
        # divide (no HW unit); fine for occasional use, pad k_len if hot.
        i = p // k_len
        j = p - i * k_len
    n = i - j                                  # n = -(k_pos - q_pos)

    ret = jnp.where(n < 0, half_buckets, 0).astype(jnp.int32)
    n_abs = jnp.abs(n)
    is_small = n_abs < max_exact

    ratio = n_abs.astype(jnp.float32) * inv_max_exact + 1e-8
    # float->int32 cast truncates toward zero, matching torch .long()
    val_if_large = max_exact + (jnp.log(ratio) * log_mult).astype(jnp.int32)
    val_if_large = jnp.minimum(val_if_large, half_buckets - 1)

    bucket = ret + jnp.where(is_small, n_abs, val_if_large)   # [1, tile]

    # Gather as a one-hot matmul on the MXU:
    #   onehot[b, p] = (bucket[p] == b);  out[h, p] = sum_b W[b, h] * onehot[b, p]
    w = w_ref[...]
    if w.dtype == jnp.bfloat16:
        lhs = w                                # single-pass bf16 MXU path
        onehot_dtype = jnp.bfloat16            # exact: entries are 0/1
    else:
        lhs = w.astype(jnp.float32)
        onehot_dtype = jnp.float32

    b_iota = jax.lax.broadcasted_iota(jnp.int32, (num_buckets, tile), 0)
    onehot = (b_iota == bucket).astype(onehot_dtype)          # [num_buckets, tile]

    out = jax.lax.dot_general(
        lhs, onehot,
        dimension_numbers=(((0,), (0,)), ((), ())),           # contract bucket dim
        preferred_element_type=jnp.float32,
    )                                                          # [heads, tile]
    o_ref[...] = out.astype(o_ref.dtype)


def relative_position_bias(weight, q_len, k_len, *, num_buckets=32, max_distance=128,
                           target_tile=4096):
    """Pallas equivalent of RelativePositionBias.forward.

    :param weight: embedding table [num_buckets, heads]
    :return: bias of shape [heads, q_len, k_len] (dtype = weight.dtype)
    """
    nb, heads = weight.shape
    assert nb == num_buckets

    qk = q_len * k_len
    # Lane tile: multiple of 128 (unmasked stores), capped at target_tile so the
    # per-step [num_buckets, tile] one-hot + output block stay tiny in VMEM on
    # every generation (v5e/v6e/v7x scoped defaults are all comfortably enough).
    tile = min(_round_up(qk, 128), target_tile)
    qk_pad = _round_up(qk, tile)
    grid = (qk_pad // tile,)

    out = pl.pallas_call(
        functools.partial(
            _rel_pos_bias_kernel,
            k_len=k_len,
            tile=tile,
            num_buckets=num_buckets,
            max_distance=max_distance,
        ),
        out_shape=jax.ShapeDtypeStruct((heads, qk_pad), weight.dtype),
        grid_spec=pltpu.PrefetchScalarGridSpec(
            num_scalar_prefetch=0,
            grid=grid,
            in_specs=[
                # W: same (only) block every step -> stays resident in VMEM.
                pl.BlockSpec((num_buckets, heads), lambda t: (0, 0)),
            ],
            out_specs=pl.BlockSpec((heads, tile), lambda t: (0, t)),
        ),
        compiler_params=pltpu.CompilerParams(
            dimension_semantics=("parallel",),   # position tiles are independent
        ),
    )(weight)

    # Drop flat padding (no-op slice when qk is already a multiple of 128),
    # then the [heads, q*k] -> [heads, q, k] reshape is contiguous / free.
    return out[:, :qk].reshape(heads, q_len, k_len)


def relative_position_bias_ref(weight, q_len, k_len, *, num_buckets=32, max_distance=128):
    """Pure-JAX reference mirroring the PyTorch forward exactly."""
    half_buckets = num_buckets // 2
    max_exact = half_buckets // 2
    log_mult = (half_buckets - max_exact) / math.log(max_distance / max_exact)

    q_pos = jnp.arange(q_len, dtype=jnp.int32)
    k_pos = jnp.arange(k_len, dtype=jnp.int32)
    rel_pos = k_pos[None, :] - q_pos[:, None]
    n = -rel_pos
    ret = (n < 0).astype(jnp.int32) * half_buckets
    n = jnp.abs(n)
    is_small = n < max_exact
    ratio = n.astype(jnp.float32) / float(max_exact) + 1e-8
    val_if_large = max_exact + (jnp.log(ratio) * log_mult).astype(jnp.int32)
    val_if_large = jnp.minimum(val_if_large, half_buckets - 1)
    bucket = ret + jnp.where(is_small, n, val_if_large)        # [q_len, k_len]
    values = weight[bucket]                                    # [q_len, k_len, heads]
    return jnp.transpose(values, (2, 0, 1))                    # [heads, q_len, k_len]


if __name__ == "__main__":
    heads, num_buckets, max_distance = 8, 32, 128
    key = jax.random.PRNGKey(0)
    weight = jax.random.normal(key, (num_buckets, heads), dtype=jnp.float32)

    # Case 1: power-of-two sizes (shift/mask path, flat axis already 128-aligned).
    q_len = k_len = 16
    out = relative_position_bias(
        weight, q_len, k_len, num_buckets=num_buckets, max_distance=max_distance
    )
    out = jax.block_until_ready(out)
    ref = relative_position_bias_ref(
        weight, q_len, k_len, num_buckets=num_buckets, max_distance=max_distance
    )
    assert out.shape == (heads, q_len, k_len), out.shape
    assert jnp.allclose(out, ref, atol=1e-6, rtol=1e-6), float(
        jnp.max(jnp.abs(out - ref))
    )

    # Case 2: non-power-of-two, unaligned sizes (divide fallback + flat padding).
    q_len2, k_len2 = 12, 10
    out2 = relative_position_bias(
        weight, q_len2, k_len2, num_buckets=num_buckets, max_distance=max_distance
    )
    out2 = jax.block_until_ready(out2)
    ref2 = relative_position_bias_ref(
        weight, q_len2, k_len2, num_buckets=num_buckets, max_distance=max_distance
    )
    assert out2.shape == (heads, q_len2, k_len2), out2.shape
    assert jnp.allclose(out2, ref2, atol=1e-6, rtol=1e-6), float(
        jnp.max(jnp.abs(out2 - ref2))
    )

    print("KERNEL_OK")
</pallas_src>

<mosaic_0001>
module attributes {stable_mosaic.version = 11 : i64} {
  func.func @_rel_pos_bias_kernel(%arg0: i32, %arg1: memref<32x8xf32, #tpu.memory_space<vmem>>, %arg2: memref<8x256xf32, #tpu.memory_space<vmem>>) attributes {dimension_semantics = [#tpu.dimension_semantics<parallel>], iteration_bounds = array<i64: 1>, scalar_prefetch = 0 : i64, scratch_operands = 0 : i64, tpu.core_type = #tpu.core_type<tc>, window_params = [{pipeline_mode = #tpu.pipeline_mode<synchronous>, transform_indices = @transform_0, window_bounds = array<i64: 32, 8>}, {transform_indices = @transform_1, window_bounds = array<i64: 8, 256>}]} {
    %0 = tpu.iota {dimensions = array<i32: 1>} : vector<1x256xi32>
    %c256_i32 = arith.constant 256 : i32
    %1 = arith.muli %arg0, %c256_i32 : i32
    %2 = vector.broadcast %1 : i32 to vector<1x256xi32>
    %3 = arith.addi %0, %2 : vector<1x256xi32>
    %c4_i32 = arith.constant 4 : i32
    %4 = vector.broadcast %c4_i32 : i32 to vector<1x256xi32>
    %5 = arith.shrsi %3, %4 : vector<1x256xi32>
    %c15_i32 = arith.constant 15 : i32
    %6 = vector.broadcast %c15_i32 : i32 to vector<1x256xi32>
    %7 = arith.andi %3, %6 : vector<1x256xi32>
    %8 = arith.subi %5, %7 : vector<1x256xi32>
    %c0_i32 = arith.constant 0 : i32
    %9 = vector.broadcast %c0_i32 : i32 to vector<1x256xi32>
    %10 = arith.cmpi slt, %8, %9 : vector<1x256xi32>
    %c16_i32 = arith.constant 16 : i32
    %c0_i32_0 = arith.constant 0 : i32
    %11 = vector.broadcast %c16_i32 : i32 to vector<1x256xi32>
    %12 = vector.broadcast %c0_i32_0 : i32 to vector<1x256xi32>
    %13 = arith.select %10, %11, %12 : vector<1x256xi1>, vector<1x256xi32>
    %14 = math.absi %8 : vector<1x256xi32>
    %c8_i32 = arith.constant 8 : i32
    %15 = vector.broadcast %c8_i32 : i32 to vector<1x256xi32>
    %16 = arith.cmpi slt, %14, %15 : vector<1x256xi32>
    %17 = arith.sitofp %14 : vector<1x256xi32> to vector<1x256xf32>
    %cst = arith.constant 1.250000e-01 : f32
    %18 = vector.broadcast %cst : f32 to vector<1x256xf32>
    %19 = arith.mulf %17, %18 : vector<1x256xf32>
    %cst_1 = arith.constant 9.99999993E-9 : f32
    %20 = vector.broadcast %cst_1 : f32 to vector<1x256xf32>
    %21 = arith.addf %19, %20 : vector<1x256xf32>
    %22 = math.log %21 : vector<1x256xf32>
    %cst_2 = arith.constant 2.885390e+00 : f32
    %23 = vector.broadcast %cst_2 : f32 to vector<1x256xf32>
    %24 = arith.mulf %22, %23 : vector<1x256xf32>
    %25 = arith.fptosi %24 : vector<1x256xf32> to vector<1x256xi32>
    %c8_i32_3 = arith.constant 8 : i32
    %26 = vector.broadcast %c8_i32_3 : i32 to vector<1x256xi32>
    %27 = arith.addi %26, %25 : vector<1x256xi32>
    %c15_i32_4 = arith.constant 15 : i32
    %28 = vector.broadcast %c15_i32_4 : i32 to vector<1x256xi32>
    %29 = arith.minsi %27, %28 : vector<1x256xi32>
    %30 = arith.select %16, %14, %29 : vector<1x256xi1>, vector<1x256xi32>
    %31 = arith.addi %13, %30 : vector<1x256xi32>
    %c0 = arith.constant 0 : index
    %c0_5 = arith.constant 0 : index
    %32 = vector.load %arg1[%c0, %c0_5] : memref<32x8xf32, #tpu.memory_space<vmem>>, vector<32x8xf32>
    %33 = tpu.iota {dimensions = array<i32: 0>} : vector<32x256xi32>
    %34 = vector.broadcast %31 : vector<1x256xi32> to vector<32x256xi32>
    %35 = arith.cmpi eq, %33, %34 : vector<32x256xi32>
    %36 = arith.extui %35 : vector<32x256xi1> to vector<32x256xi32>
    %37 = arith.sitofp %36 : vector<32x256xi32> to vector<32x256xf32>
    %cst_6 = arith.constant dense<0.000000e+00> : vector<8x256xf32>
    %38 = tpu.matmul %32, %37, %cst_6 {dimension_numbers = #tpu.dot_dimension_numbers<[0], [0], [1], [1], [0, 1, 1, 1], [], []>} : vector<32x8xf32>, vector<32x256xf32>, vector<8x256xf32> -> vector<8x256xf32>
    %c0_7 = arith.constant 0 : index
    %c0_8 = arith.constant 0 : index
    %39 = vector.load %arg2[%c0_7, %c0_8] : memref<8x256xf32, #tpu.memory_space<vmem>>, vector<8x256xf32>
    tpu.vector_store %arg2[%c0_7, %c0_8], %38 {strides = array<i32>} : memref<8x256xf32, #tpu.memory_space<vmem>>, vector<8x256xf32>,
    return
  }
  func.func @transform_0(%arg0: i32) -> (i32, i32) {
    %c0_i32 = arith.constant 0 : i32
    %c0_i32_0 = arith.constant 0 : i32
    %c0_i32_1 = arith.constant 0 : i32
    return %c0_i32, %c0_i32_0 : i32, i32
  }
  func.func @transform_1(%arg0: i32) -> (i32, i32) {
    %c0_i32 = arith.constant 0 : i32
    %c0_i32_0 = arith.constant 0 : i32
    return %c0_i32, %arg0 : i32, i32
  }
}

</mosaic_0001>

<bundles_post_ra>
// kernel: tpu_custom_call.1
= control target key start
LH: loop header
LB: loop body
LE: loop exit
PB: predicated region body
PF: predicated region fallthrough
CT: control target
= control target key end

     0   :  { %v9_v1 = vlaneseq  ;;  %s277_s0 = inlined_call_operand.vmem [shape: f32[32,8], index: 0, kind: input, shape index: {}]   ;;  %s278_s1 = inlined_call_operand.hbm [shape: f32[8,256], index: 1, kind: output, shape index: {}]  }
   0x1   :  { %v56_v0 = vld [vmem:[%s277_s0] sm:$0xff] }
   0x2   :  { %89 = vxpose.xlu0.b32.start [1/4] (short) (narrow) %v56_v0, 8 }
   0x3   :  { %6 = vsyncpa [#allocation3], 0  ;;  %v10_v2 = vand.u32 127, %v9_v1  ;;  %v57_v5 = vld [vmem:[%s277_s0 + $0x8] sm:$0xff]  ;;  %v58_v15 = vld [vmem:[%s277_s0 + $0x10] sm:$0xff]  ;;  %v61_v32 = vshrl.u32 %v9_v1, 7 }
   0x4   :  { %v59_v21 = vld [vmem:[%s277_s0 + $0x18] sm:$0xff]  ;;  %v245_v35 = vmov 0   ;;  %v246_v48 = vmov 1.0   ;;  %s247_s0 = smov [#allocation2]   ;;  %s174_s17 = sshll.u32 %s278_s1, 4  ;;  %s175_s17 = int_to_ptr.hbm [resolvable:$true] %s174_s17 }
   0x5   :  { %v16_v3 = vshra.s32 %v10_v2, 4  ;;  %v18_v4 = vand.u32 15, %v10_v2  ;;  %v11_v8 = vadd.s32 128, %v10_v2  ;;  %v64_v40 = vadd.s32 24, %v61_v32  ;;  %s172_s14 = sshll.u32 %s247_s0, 4  ;;  %s173_s14 = int_to_ptr.vmem [resolvable:$true] %s172_s14 }
   0x6   :  { %v63_v41 = vadd.s32 16, %v61_v32  ;;  %v62_v46 = vadd.s32 8, %v61_v32 }
   0x7   :  { %v20_v6 = vsub.s32 %v16_v3, %v18_v4  ;;  %v17_v11 = vshra.s32 %v11_v8, 4  ;;  %v19_v12 = vand.u32 15, %v11_v8 }
   0x9   :  { %vm22_vm0 = vcmp.lt.s32.totalorder %v20_v6, 0  ;;  %v26_v7 = vsub.s32 0, %v20_v6  ;;  %v21_v14 = vsub.s32 %v17_v11, %v19_v12 }
   0xa   :  { %90 = vxpose.xlu0.b32.cont [2/4] (short) (narrow) %v57_v5, 8  ;;  %v24_v36 = vsel %vm22_vm0, 16, %v245_v35 }
   0xb   :  { %v27_v9 = vsel %vm22_vm0, %v26_v7, %v20_v6  ;;  %vm23_vm1 = vcmp.lt.s32.totalorder %v21_v14, 0  ;;  %v28_v17 = vsub.s32 0, %v21_v14  ;;  %vm121_vm0 = vcmask 261120  }
   0xc   :  { %v32_v10 = vcvt.s32.f32 %v27_v9  ;;  %vm30_vm3 = vcmp.lt.s32.totalorder %v27_v9, 8  ;;  %v25_v49 = vsel %vm23_vm1, 16, %v245_v35 }
   0xd   :  { %v29_v18 = vsel %vm23_vm1, %v28_v17, %v21_v14 }
   0xe   :  { %v34_v13 = vmul.f32 0.125, %v32_v10  ;;  %v33_v19 = vcvt.s32.f32 %v29_v18  ;;  %vm31_vm8 = vcmp.lt.s32.totalorder %v29_v18, 8 }
  0x10   :  { %v36_v16 = vadd.f32 1e-08, %v34_v13  ;;  %v35_v20 = vmul.f32 0.125, %v33_v19 }
  0x12   :  { %91 = vxpose.xlu0.b32.cont [3/4] (short) (narrow) %v58_v15, 8  ;;  %215 = vlog2.f32 %v36_v16  ;;  %v37_v22 = vadd.f32 1e-08, %v35_v20 }
  0x14   :  { %217 = vlog2.f32 %v37_v22 }
  0x18   :  { %v216_v23 = vpop.eup %215 }
  0x19   :  { %v39_v24 = vmul.f32 0.6931472, %v216_v23 }
  0x1a   :  { %92 = vxpose.xlu0.b32.end [4/4] (short) (narrow) %v59_v21, 8  ;;  %v218_v28 = vpop.eup %217 }
  0x1b   :  { %v42_v25 = vmul.f32 2.88539, %v39_v24  ;;  %v41_v31 = vmul.f32 0.6931472, %v218_v28 }
  0x1d   :  { %vm201_vm2 = vcmp.lt.s32.totalorder %v42_v25, 0  ;;  %v202_v26 = vceil.f32 %v42_v25  ;;  %v203_v27 = vfloor.f32 %v42_v25  ;;  %v43_v34 = vmul.f32 2.88539, %v41_v31 }
  0x1f   :  { %v204_v29 = vsel %vm201_vm2, %v202_v26, %v203_v27  ;;  %vm206_vm5 = vcmp.lt.s32.totalorder %v43_v34, 0  ;;  %v207_v37 = vceil.f32 %v43_v34  ;;  %v208_v38 = vfloor.f32 %v43_v34 }
  0x20   :  { %v205_v30 = vcvt.f32.s32 %v204_v29 }
  0x21   :  { %v209_v43 = vsel %vm206_vm5, %v207_v37, %v208_v38 }
  0x22   :  { %v46_v33 = vadd.s32 8, %v205_v30  ;;  %v210_v45 = vcvt.f32.s32 %v209_v43 }
  0x24   :  { %vm48_vm4 = vcmp.lt.s32.totalorder %v46_v33, 15  ;;  %v47_v47 = vadd.s32 8, %v210_v45 }
  0x25   :  { %v49_v39 = vsel %vm48_vm4, %v46_v33, 15 }
  0x26   :  { %v52_v42 = vsel %vm30_vm3, %v27_v9, %v49_v39  ;;  %vm50_vm9 = vcmp.lt.s32.totalorder %v47_v47, 15 }
  0x27   :  { %v54_v44 = vadd.s32 %v52_v42, %v24_v36  ;;  %v51_v50 = vsel %vm50_vm9, %v47_v47, 15 }
  0x28   :  { %v53_v51 = vsel %vm31_vm8, %v29_v18, %v51_v50 }
  0x29   :  { %vm71_vm6 = vcmp.eq.s32.totalorder %v64_v40, %v54_v44  ;;  %vm69_vm7 = vcmp.eq.s32.totalorder %v63_v41, %v54_v44  ;;  %vm67_vm10 = vcmp.eq.s32.totalorder %v62_v46, %v54_v44  ;;  %v55_v52 = vadd.s32 %v53_v51, %v25_v49 }
  0x2a   :  { %191 = vmatpush.msk.msra.mxu0 %vm71_vm6, %v246_v48  ;;  %vm65_vm14 = vcmp.eq.s32.totalorder %v61_v32, %v54_v44 }
  0x2b   :  { %vm72_vm11 = vcmp.eq.s32.totalorder %v64_v40, %v55_v52  ;;  %vm70_vm12 = vcmp.eq.s32.totalorder %v63_v41, %v55_v52  ;;  %vm68_vm13 = vcmp.eq.s32.totalorder %v62_v46, %v55_v52  ;;  %vm66_vm15 = vcmp.eq.s32.totalorder %v61_v32, %v55_v52 }
  0x2c   :  { %192 = vmatpush.msk.msra.mxu0 %vm69_vm7, %v246_v48  ;;  %196 = vmatpush.msk.msra.mxu1 %vm72_vm11, %v246_v48 }
  0x2e   :  { %193 = vmatpush.msk.msra.mxu0 %vm67_vm10, %v246_v48  ;;  %197 = vmatpush.msk.msra.mxu1 %vm70_vm12, %v246_v48 }
  0x30   :  { %198 = vmatpush.msk.msra.mxu1 %vm68_vm13, %v246_v48  ;;  %194 = vmatpush.msk.msra.mxu0 %vm65_vm14, %v246_v48 }
  0x32   :  { %199 = vmatpush.msk.msra.mxu1 %vm66_vm15, %v246_v48 }
  0xa6   :  { %v105_v53 = vpop.trf.xlu0 }
  0xa7   :  { %195 = vmatmul.msk.f32.vlgmr.msra.gmra.mxu0 %vm121_vm0, %v105_v53  ;;  %200 = vmatmul.msk.f32.vlgmr.msra.gmra.mxu1 %vm121_vm0, %v105_v53 }
 0x124   :  { %v142_v54 = vpop.f32.mrf.mxu0  ;;  %v162_v55 = vpop.f32.mrf.mxu1 }
 0x125   :  { %165 = vst [vmem:[#allocation2] sm:$0xff] %v142_v54 }
 0x126   :  { %166 = vst [vmem:[#allocation2 + $0x8] sm:$0xff] %v162_v55 }
 0x127   :  { %177 = dma.vmem_to_hbm [thread:$0]  %s173_s14, 256, %s175_s17, [#allocation3]  }
 0x128   :  { %243 = dma.done.wait [#allocation3], 256  }
 0x129   :  { %244 = vsyncadd [#allocation3], 4294967040 }
 0x12a   :  { %182 = vsyncpa [#allocation3], 1 }

</bundles_post_ra>
